<compile_context>
chip_gen: v7x
topology: tpu7x:2x2x1
jax: 0.10.0
libtpu: 0.0.40
codegen_flags: <defaults>
</compile_context>

<pallas_src>
import functools

import jax
import jax.numpy as jnp
import numpy as np
from jax import lax
from jax.experimental import pallas as pl
from jax.experimental.pallas import tpu as pltpu


def _round_up(a, b):
    return (a + b - 1) // b * b


def _prelu(v, a):
    # PyTorch nn.PReLU with a single shared parameter:
    #   prelu(x) = max(0, x) + a * min(0, x)
    return jnp.maximum(v, 0.0) + a * jnp.minimum(v, 0.0)


def gn_kernel(row_ref, col_ref, ea_ref, x_ref,
              w1er_ref, w1ec_ref, w1ee_ref, b1e_ref, w2e_ref, b2e_ref,
              w1nx_ref, w1na_ref, b1n_ref, w2n_ref, b2n_ref,
              a1e_ref, a2e_ref, a1n_ref,
              out_ref, agg_ref, *, tile_n):
    i = pl.program_id(0)          # node tile (parallel)
    e = pl.program_id(1)          # edge tile (reduction)
    f32 = jnp.float32

    @pl.when(e == 0)
    def _init():
        agg_ref[...] = jnp.zeros_like(agg_ref)

    x = x_ref[...]                 # [N_pad, D]   full, resident across the grid
    row = row_ref[...]             # [tile_E, 1]  int32 (padded edges = -1)
    col = col_ref[...]             # [tile_E, 1]
    ea = ea_ref[...]               # [tile_E, De]

    n_total = x.shape[0]
    tile_e = row.shape[0]

    # One-hot gather matrices over the full node range (sentinel rows -> all zero).
    ids_full = lax.broadcasted_iota(jnp.int32, (tile_e, n_total), 1)
    row_oh = (ids_full == row).astype(f32)                    # [tile_E, N_pad]
    col_oh = (ids_full == col).astype(f32)

    x_row = jnp.dot(row_oh, x, preferred_element_type=f32)    # x[row]  [tile_E, D]
    x_col = jnp.dot(col_oh, x, preferred_element_type=f32)    # x[col]  [tile_E, D]

    # ---- edge MLP: concat([x_row, x_col, ea]) @ W1e  ==  split partial matmuls ----
    h = (jnp.dot(x_row, w1er_ref[...], preferred_element_type=f32)
         + jnp.dot(x_col, w1ec_ref[...], preferred_element_type=f32)
         + jnp.dot(ea, w1ee_ref[...], preferred_element_type=f32)
         + b1e_ref[...])
    h = _prelu(h, a1e_ref[0, 0])
    eh = jnp.dot(h, w2e_ref[...], preferred_element_type=f32) + b2e_ref[...]
    eh = _prelu(eh, a2e_ref[0, 0])                            # [tile_E, H]

    # ---- segment_sum into this node tile: transposed contraction (no [N,E] dup) ----
    if tile_n == n_total:
        scat_oh = row_oh                                      # single node tile
    else:
        ids_tile = (lax.broadcasted_iota(jnp.int32, (tile_e, tile_n), 1)
                    + i * tile_n)
        scat_oh = (ids_tile == row).astype(f32)               # [tile_E, tile_N]
    agg_ref[...] += lax.dot_general(
        scat_oh, eh, (((0,), (0,)), ((), ())),
        preferred_element_type=f32)                           # [tile_N, H]

    # ---- node MLP + lane-dense store once all edge tiles are reduced ----
    @pl.when(e == pl.num_programs(1) - 1)
    def _finalize():
        start = pl.multiple_of(i * tile_n, tile_n)
        x_tile = x_ref[pl.ds(start, tile_n), :]               # [tile_N, D]
        nh = (jnp.dot(x_tile, w1nx_ref[...], preferred_element_type=f32)
              + jnp.dot(agg_ref[...], w1na_ref[...], preferred_element_type=f32)
              + b1n_ref[...])
        nh = _prelu(nh, a1n_ref[0, 0])
        out = jnp.dot(nh, w2n_ref[...], preferred_element_type=f32) + b2n_ref[...]
        out_ref[...] = out.astype(out_ref.dtype)


def gn_layer(x, edge_index, edge_attr, params, *, tile_n=None, tile_e=None):
    """Pallas GNLayer forward.  x:[N,D] f32, edge_index:[2,E] i32, edge_attr:[E,De]."""
    N, D = x.shape
    E, De = edge_attr.shape
    H = params["w2e"].shape[1]
    outdim = params["w2n"].shape[1]

    if tile_n is None:
        tile_n = min(_round_up(N, 8), 512)
    if tile_e is None:
        tile_e = min(_round_up(E, 8), 512)
    n_pad = _round_up(N, tile_n)
    e_pad = _round_up(E, tile_e)
    out_pad = _round_up(outdim, 128)            # lane-dense output stores

    # ---- wrapper-side glue: padding, index reshape, weight slicing ----
    x_p = jnp.zeros((n_pad, D), jnp.float32).at[:N].set(x.astype(jnp.float32))
    ea_p = jnp.zeros((e_pad, De), jnp.float32).at[:E].set(edge_attr.astype(jnp.float32))
    row = jnp.full((e_pad, 1), -1, jnp.int32).at[:E, 0].set(edge_index[0].astype(jnp.int32))
    col = jnp.full((e_pad, 1), -1, jnp.int32).at[:E, 0].set(edge_index[1].astype(jnp.int32))

    w1e = params["w1e"]
    w1e_r, w1e_c, w1e_e = w1e[:D], w1e[D:2 * D], w1e[2 * D:]
    w1n = params["w1n"]
    w1n_x, w1n_a = w1n[:D], w1n[D:]

    w2n_p = jnp.zeros((H, out_pad), jnp.float32).at[:, :outdim].set(params["w2n"])
    b2n_p = jnp.zeros((1, out_pad), jnp.float32).at[:, :outdim].set(params["b2n"])

    a1e = params["a1e"].reshape(1, 1)
    a2e = params["a2e"].reshape(1, 1)
    a1n = params["a1n"].reshape(1, 1)

    operands = (row, col, ea_p, x_p,
                w1e_r, w1e_c, w1e_e, params["b1e"], params["w2e"], params["b2e"],
                w1n_x, w1n_a, params["b1n"], w2n_p, b2n_p,
                a1e, a2e, a1n)

    n_tiles = n_pad // tile_n
    e_tiles = e_pad // tile_e

    def const_spec(arr):
        return pl.BlockSpec(arr.shape, lambda i, e: (0,) * arr.ndim)

    smem_spec = pl.BlockSpec((1, 1), lambda i, e: (0, 0),
                             memory_space=pltpu.MemorySpace.SMEM)

    in_specs = [
        pl.BlockSpec((tile_e, 1), lambda i, e: (e, 0)),     # row
        pl.BlockSpec((tile_e, 1), lambda i, e: (e, 0)),     # col
        pl.BlockSpec((tile_e, De), lambda i, e: (e, 0)),    # edge_attr
        pl.BlockSpec((n_pad, D), lambda i, e: (0, 0)),      # x (resident)
        const_spec(w1e_r), const_spec(w1e_c), const_spec(w1e_e),
        const_spec(params["b1e"]), const_spec(params["w2e"]), const_spec(params["b2e"]),
        const_spec(w1n_x), const_spec(w1n_a), const_spec(params["b1n"]),
        const_spec(w2n_p), const_spec(b2n_p),
        smem_spec, smem_spec, smem_spec,                    # PReLU alphas
    ]

    # Advisory cost estimate for the XLA scheduler.
    flops = int(
        n_tiles * (4 * e_pad * n_pad * D
                   + 2 * e_pad * ((2 * D + De) * H + H * H))
        + 2 * e_pad * n_pad * H
        + 2 * n_pad * ((D + H) * H + H * out_pad))
    bytes_accessed = int(4 * (x_p.size + ea_p.size + 2 * e_pad
                              + sum(int(np.prod(p.shape)) for p in operands[4:])
                              + n_pad * out_pad))
    cost = pl.CostEstimate(flops=flops, transcendentals=0,
                           bytes_accessed=bytes_accessed)

    out_p = pl.pallas_call(
        functools.partial(gn_kernel, tile_n=tile_n),
        out_shape=jax.ShapeDtypeStruct((n_pad, out_pad), jnp.float32),
        grid_spec=pltpu.PrefetchScalarGridSpec(
            num_scalar_prefetch=0,
            grid=(n_tiles, e_tiles),
            in_specs=in_specs,
            out_specs=pl.BlockSpec((tile_n, out_pad), lambda i, e: (i, 0)),
            scratch_shapes=[pltpu.VMEM((tile_n, H), jnp.float32)],
        ),
        compiler_params=pltpu.CompilerParams(
            dimension_semantics=("parallel", "arbitrary")),
        cost_estimate=cost,
    )(*operands)

    return out_p[:N, :outdim]


def init_params(key, indim, hiddendim, outdim, edgedim):
    """Deterministic init. Linear weights stored pre-transposed as [in, out]."""
    ks = jax.random.split(key, 8)

    def lin(kw, kb, fan_in, fan_out):
        bound = 1.0 / np.sqrt(fan_in)
        w = jax.random.uniform(kw, (fan_in, fan_out), jnp.float32, -bound, bound)
        b = jax.random.uniform(kb, (1, fan_out), jnp.float32, -bound, bound)
        return w, b

    w1e, b1e = lin(ks[0], ks[1], 2 * indim + edgedim, hiddendim)
    w2e, b2e = lin(ks[2], ks[3], hiddendim, hiddendim)
    w1n, b1n = lin(ks[4], ks[5], indim + hiddendim, hiddendim)
    w2n, b2n = lin(ks[6], ks[7], hiddendim, outdim)
    a = jnp.full((1, 1), 0.25, jnp.float32)  # PReLU default init
    return dict(w1e=w1e, b1e=b1e, a1e=a, w2e=w2e, b2e=b2e, a2e=a,
                w1n=w1n, b1n=b1n, a1n=a, w2n=w2n, b2n=b2n)


def gn_layer_ref(x, edge_index, edge_attr, params):
    """Pure-JAX reference of the PyTorch forward (for verification)."""
    def prelu(v, a):
        return jnp.maximum(v, 0.0) + a * jnp.minimum(v, 0.0)

    row, col = edge_index[0], edge_index[1]
    e_in = jnp.concatenate([x[row], x[col], edge_attr], axis=1)
    h = prelu(e_in @ params["w1e"] + params["b1e"], params["a1e"])
    eh = prelu(h @ params["w2e"] + params["b2e"], params["a2e"])
    agg = jax.ops.segment_sum(eh, row, num_segments=x.shape[0])
    n_in = jnp.concatenate([x, agg], axis=1)
    nh = prelu(n_in @ params["w1n"] + params["b1n"], params["a1n"])
    return nh @ params["w2n"] + params["b2n"]


if __name__ == "__main__":
    indim, hiddendim, outdim, edgedim = 8, 32, 16, 4

    key = jax.random.PRNGKey(0)
    kp, kcase = jax.random.split(key)
    params = init_params(kp, indim, hiddendim, outdim, edgedim)

    # case 1: single-tile grid; case 2: multi-tile grid with padded remainders.
    cases = [
        dict(N=8, E=16, tiles=dict()),
        dict(N=20, E=37, tiles=dict(tile_n=8, tile_e=16)),
    ]
    for c in cases:
        kx, ke, ki, kcase = jax.random.split(kcase, 4)
        x = jax.random.normal(kx, (c["N"], indim), jnp.float32)
        edge_attr = jax.random.normal(ke, (c["E"], edgedim), jnp.float32)
        edge_index = jax.random.randint(ki, (2, c["E"]), 0, c["N"], jnp.int32)

        out = jax.block_until_ready(
            gn_layer(x, edge_index, edge_attr, params, **c["tiles"]))
        ref = jax.block_until_ready(gn_layer_ref(x, edge_index, edge_attr, params))
        np.testing.assert_allclose(np.asarray(out), np.asarray(ref),
                                   rtol=1e-4, atol=1e-5)

    print("KERNEL_OK")
</pallas_src>

<mosaic_0001>
module attributes {stable_mosaic.version = 11 : i64} {
  func.func @gn_kernel(%arg0: i32, %arg1: i32, %arg2: memref<16x1xi32, #tpu.memory_space<vmem>>, %arg3: memref<16x1xi32, #tpu.memory_space<vmem>>, %arg4: memref<16x4xf32, #tpu.memory_space<vmem>>, %arg5: memref<8x8xf32, #tpu.memory_space<vmem>>, %arg6: memref<8x32xf32, #tpu.memory_space<vmem>>, %arg7: memref<8x32xf32, #tpu.memory_space<vmem>>, %arg8: memref<4x32xf32, #tpu.memory_space<vmem>>, %arg9: memref<1x32xf32, #tpu.memory_space<vmem>>, %arg10: memref<32x32xf32, #tpu.memory_space<vmem>>, %arg11: memref<1x32xf32, #tpu.memory_space<vmem>>, %arg12: memref<8x32xf32, #tpu.memory_space<vmem>>, %arg13: memref<32x32xf32, #tpu.memory_space<vmem>>, %arg14: memref<1x32xf32, #tpu.memory_space<vmem>>, %arg15: memref<32x128xf32, #tpu.memory_space<vmem>>, %arg16: memref<1x128xf32, #tpu.memory_space<vmem>>, %arg17: memref<1x1xf32, #tpu.memory_space<smem>>, %arg18: memref<1x1xf32, #tpu.memory_space<smem>>, %arg19: memref<1x1xf32, #tpu.memory_space<smem>>, %arg20: memref<8x128xf32, #tpu.memory_space<vmem>>, %arg21: memref<8x32xf32, #tpu.memory_space<vmem>>) attributes {dimension_semantics = [#tpu.dimension_semantics<parallel>, #tpu.dimension_semantics<arbitrary>], iteration_bounds = array<i64: 1, 1>, scalar_prefetch = 0 : i64, scratch_operands = 1 : i64, tpu.core_type = #tpu.core_type<tc>, window_params = [{transform_indices = @transform_0, window_bounds = array<i64: 16, 1>}, {transform_indices = @transform_1, window_bounds = array<i64: 16, 1>}, {transform_indices = @transform_2, window_bounds = array<i64: 16, 4>}, {pipeline_mode = #tpu.pipeline_mode<synchronous>, transform_indices = @transform_3, window_bounds = array<i64: 8, 8>}, {pipeline_mode = #tpu.pipeline_mode<synchronous>, transform_indices = @transform_4, window_bounds = array<i64: 8, 32>}, {pipeline_mode = #tpu.pipeline_mode<synchronous>, transform_indices = @transform_5, window_bounds = array<i64: 8, 32>}, {pipeline_mode = #tpu.pipeline_mode<synchronous>, transform_indices = @transform_6, window_bounds = array<i64: 4, 32>}, {pipeline_mode = #tpu.pipeline_mode<synchronous>, transform_indices = @transform_7, window_bounds = array<i64: 1, 32>}, {pipeline_mode = #tpu.pipeline_mode<synchronous>, transform_indices = @transform_8, window_bounds = array<i64: 32, 32>}, {pipeline_mode = #tpu.pipeline_mode<synchronous>, transform_indices = @transform_9, window_bounds = array<i64: 1, 32>}, {pipeline_mode = #tpu.pipeline_mode<synchronous>, transform_indices = @transform_10, window_bounds = array<i64: 8, 32>}, {pipeline_mode = #tpu.pipeline_mode<synchronous>, transform_indices = @transform_11, window_bounds = array<i64: 32, 32>}, {pipeline_mode = #tpu.pipeline_mode<synchronous>, transform_indices = @transform_12, window_bounds = array<i64: 1, 32>}, {pipeline_mode = #tpu.pipeline_mode<synchronous>, transform_indices = @transform_13, window_bounds = array<i64: 32, 128>}, {pipeline_mode = #tpu.pipeline_mode<synchronous>, transform_indices = @transform_14, window_bounds = array<i64: 1, 128>}, {transform_indices = @transform_15, window_bounds = array<i64: 1, 1>}, {transform_indices = @transform_16, window_bounds = array<i64: 1, 1>}, {transform_indices = @transform_17, window_bounds = array<i64: 1, 1>}, {transform_indices = @transform_18, window_bounds = array<i64: 8, 128>}]} {
    %c0_i32 = arith.constant 0 : i32
    %0 = arith.cmpi eq, %arg1, %c0_i32 : i32
    %1 = arith.extui %0 : i1 to i32
    %c0_i32_0 = arith.constant 0 : i32
    %2 = arith.cmpi ne, %1, %c0_i32_0 : i32
    scf.if %2 {
      %cst_40 = arith.constant 0.000000e+00 : f32
      %57 = vector.broadcast %cst_40 : f32 to vector<8x32xf32>
      %c0_41 = arith.constant 0 : index
      %c0_42 = arith.constant 0 : index
      %58 = vector.load %arg21[%c0_41, %c0_42] : memref<8x32xf32, #tpu.memory_space<vmem>>, vector<8x32xf32>
      tpu.vector_store %arg21[%c0_41, %c0_42], %57 {strides = array<i32>} : memref<8x32xf32, #tpu.memory_space<vmem>>, vector<8x32xf32>,
    } else {
    }
    %c0 = arith.constant 0 : index
    %c0_1 = arith.constant 0 : index
    %3 = vector.load %arg5[%c0, %c0_1] : memref<8x8xf32, #tpu.memory_space<vmem>>, vector<8x8xf32>
    %c0_2 = arith.constant 0 : index
    %c0_3 = arith.constant 0 : index
    %4 = vector.load %arg2[%c0_2, %c0_3] : memref<16x1xi32, #tpu.memory_space<vmem>>, vector<16x1xi32>
    %c0_4 = arith.constant 0 : index
    %c0_5 = arith.constant 0 : index
    %5 = vector.load %arg3[%c0_4, %c0_5] : memref<16x1xi32, #tpu.memory_space<vmem>>, vector<16x1xi32>
    %c0_6 = arith.constant 0 : index
    %c0_7 = arith.constant 0 : index
    %6 = vector.load %arg4[%c0_6, %c0_7] : memref<16x4xf32, #tpu.memory_space<vmem>>, vector<16x4xf32>
    %7 = tpu.iota {dimensions = array<i32: 1>} : vector<16x8xi32>
    %8 = vector.broadcast %4 : vector<16x1xi32> to vector<16x8xi32>
    %9 = arith.cmpi eq, %7, %8 : vector<16x8xi32>
    %10 = arith.extui %9 : vector<16x8xi1> to vector<16x8xi32>
    %11 = arith.sitofp %10 : vector<16x8xi32> to vector<16x8xf32>
    %12 = vector.broadcast %5 : vector<16x1xi32> to vector<16x8xi32>
    %13 = arith.cmpi eq, %7, %12 : vector<16x8xi32>
    %14 = arith.extui %13 : vector<16x8xi1> to vector<16x8xi32>
    %15 = arith.sitofp %14 : vector<16x8xi32> to vector<16x8xf32>
    %cst = arith.constant dense<0.000000e+00> : vector<16x8xf32>
    %16 = tpu.matmul %11, %3, %cst {dimension_numbers = #tpu.dot_dimension_numbers<[1], [0], [0], [1], [0, 0, 1, 1], [], []>} : vector<16x8xf32>, vector<8x8xf32>, vector<16x8xf32> -> vector<16x8xf32>
    %cst_8 = arith.constant dense<0.000000e+00> : vector<16x8xf32>
    %17 = tpu.matmul %15, %3, %cst_8 {dimension_numbers = #tpu.dot_dimension_numbers<[1], [0], [0], [1], [0, 0, 1, 1], [], []>} : vector<16x8xf32>, vector<8x8xf32>, vector<16x8xf32> -> vector<16x8xf32>
    %c0_9 = arith.constant 0 : index
    %c0_10 = arith.constant 0 : index
    %18 = vector.load %arg6[%c0_9, %c0_10] : memref<8x32xf32, #tpu.memory_space<vmem>>, vector<8x32xf32>
    %cst_11 = arith.constant dense<0.000000e+00> : vector<16x32xf32>
    %19 = tpu.matmul %16, %18, %cst_11 {dimension_numbers = #tpu.dot_dimension_numbers<[1], [0], [0], [1], [0, 0, 1, 1], [], []>} : vector<16x8xf32>, vector<8x32xf32>, vector<16x32xf32> -> vector<16x32xf32>
    %c0_12 = arith.constant 0 : index
    %c0_13 = arith.constant 0 : index
    %20 = vector.load %arg7[%c0_12, %c0_13] : memref<8x32xf32, #tpu.memory_space<vmem>>, vector<8x32xf32>
    %cst_14 = arith.constant dense<0.000000e+00> : vector<16x32xf32>
    %21 = tpu.matmul %17, %20, %cst_14 {dimension_numbers = #tpu.dot_dimension_numbers<[1], [0], [0], [1], [0, 0, 1, 1], [], []>} : vector<16x8xf32>, vector<8x32xf32>, vector<16x32xf32> -> vector<16x32xf32>
    %22 = arith.addf %19, %21 : vector<16x32xf32>
    %c0_15 = arith.constant 0 : index
    %c0_16 = arith.constant 0 : index
    %23 = vector.load %arg8[%c0_15, %c0_16] : memref<4x32xf32, #tpu.memory_space<vmem>>, vector<4x32xf32>
    %cst_17 = arith.constant dense<0.000000e+00> : vector<16x32xf32>
    %24 = tpu.matmul %6, %23, %cst_17 {dimension_numbers = #tpu.dot_dimension_numbers<[1], [0], [0], [1], [0, 0, 1, 1], [], []>} : vector<16x4xf32>, vector<4x32xf32>, vector<16x32xf32> -> vector<16x32xf32>
    %25 = arith.addf %22, %24 : vector<16x32xf32>
    %c0_18 = arith.constant 0 : index
    %c0_19 = arith.constant 0 : index
    %26 = vector.load %arg9[%c0_18, %c0_19] : memref<1x32xf32, #tpu.memory_space<vmem>>, vector<1x32xf32>
    %27 = vector.broadcast %26 : vector<1x32xf32> to vector<16x32xf32>
    %28 = arith.addf %25, %27 : vector<16x32xf32>
    %c0_20 = arith.constant 0 : index
    %c0_21 = arith.constant 0 : index
    %29 = memref.load %arg17[%c0_20, %c0_21] : memref<1x1xf32, #tpu.memory_space<smem>>
    %cst_22 = arith.constant 0.000000e+00 : f32
    %30 = vector.broadcast %cst_22 : f32 to vector<16x32xf32>
    %31 = arith.maximumf %28, %30 : vector<16x32xf32>
    %cst_23 = arith.constant 0.000000e+00 : f32
    %32 = vector.broadcast %cst_23 : f32 to vector<16x32xf32>
    %33 = arith.minimumf %28, %32 : vector<16x32xf32>
    %34 = vector.broadcast %29 : f32 to vector<16x32xf32>
    %35 = arith.mulf %34, %33 : vector<16x32xf32>
    %36 = arith.addf %31, %35 : vector<16x32xf32>
    %c0_24 = arith.constant 0 : index
    %c0_25 = arith.constant 0 : index
    %37 = vector.load %arg10[%c0_24, %c0_25] : memref<32x32xf32, #tpu.memory_space<vmem>>, vector<32x32xf32>
    %cst_26 = arith.constant dense<0.000000e+00> : vector<16x32xf32>
    %38 = tpu.matmul %36, %37, %cst_26 {dimension_numbers = #tpu.dot_dimension_numbers<[1], [0], [0], [1], [0, 0, 1, 1], [], []>} : vector<16x32xf32>, vector<32x32xf32>, vector<16x32xf32> -> vector<16x32xf32>
    %c0_27 = arith.constant 0 : index
    %c0_28 = arith.constant 0 : index
    %39 = vector.load %arg11[%c0_27, %c0_28] : memref<1x32xf32, #tpu.memory_space<vmem>>, vector<1x32xf32>
    %40 = vector.broadcast %39 : vector<1x32xf32> to vector<16x32xf32>
    %41 = arith.addf %38, %40 : vector<16x32xf32>
    %c0_29 = arith.constant 0 : index
    %c0_30 = arith.constant 0 : index
    %42 = memref.load %arg18[%c0_29, %c0_30] : memref<1x1xf32, #tpu.memory_space<smem>>
    %cst_31 = arith.constant 0.000000e+00 : f32
    %43 = vector.broadcast %cst_31 : f32 to vector<16x32xf32>
    %44 = arith.maximumf %41, %43 : vector<16x32xf32>
    %cst_32 = arith.constant 0.000000e+00 : f32
    %45 = vector.broadcast %cst_32 : f32 to vector<16x32xf32>
    %46 = arith.minimumf %41, %45 : vector<16x32xf32>
    %47 = vector.broadcast %42 : f32 to vector<16x32xf32>
    %48 = arith.mulf %47, %46 : vector<16x32xf32>
    %49 = arith.addf %44, %48 : vector<16x32xf32>
    %c0_33 = arith.constant 0 : index
    %c0_34 = arith.constant 0 : index
    %50 = vector.load %arg21[%c0_33, %c0_34] : memref<8x32xf32, #tpu.memory_space<vmem>>, vector<8x32xf32>
    %cst_35 = arith.constant dense<0.000000e+00> : vector<8x32xf32>
    %51 = tpu.matmul %11, %49, %cst_35 {dimension_numbers = #tpu.dot_dimension_numbers<[0], [0], [1], [1], [0, 1, 1, 1], [], []>} : vector<16x8xf32>, vector<16x32xf32>, vector<8x32xf32> -> vector<8x32xf32>
    %52 = arith.addf %50, %51 : vector<8x32xf32>
    %c0_36 = arith.constant 0 : index
    %c0_37 = arith.constant 0 : index
    %53 = vector.load %arg21[%c0_36, %c0_37] : memref<8x32xf32, #tpu.memory_space<vmem>>, vector<8x32xf32>
    tpu.vector_store %arg21[%c0_36, %c0_37], %52 {strides = array<i32>} : memref<8x32xf32, #tpu.memory_space<vmem>>, vector<8x32xf32>,
    %c0_i32_38 = arith.constant 0 : i32
    %54 = arith.cmpi eq, %arg1, %c0_i32_38 : i32
    %55 = arith.extui %54 : i1 to i32
    %c0_i32_39 = arith.constant 0 : i32
    %56 = arith.cmpi ne, %55, %c0_i32_39 : i32
    scf.if %56 {
      %c8_i32 = arith.constant 8 : i32
      %57 = arith.muli %arg0, %c8_i32 : i32
      %58 = tpu.assume_multiple %57, 8 : i32
      %59 = arith.index_cast %58 : i32 to index
      %c0_40 = arith.constant 0 : index
      %60 = vector.load %arg5[%59, %c0_40] : memref<8x8xf32, #tpu.memory_space<vmem>>, vector<8x8xf32>
      %c0_41 = arith.constant 0 : index
      %c0_42 = arith.constant 0 : index
      %61 = vector.load %arg12[%c0_41, %c0_42] : memref<8x32xf32, #tpu.memory_space<vmem>>, vector<8x32xf32>
      %cst_43 = arith.constant dense<0.000000e+00> : vector<8x32xf32>
      %62 = tpu.matmul %60, %61, %cst_43 {dimension_numbers = #tpu.dot_dimension_numbers<[1], [0], [0], [1], [0, 0, 1, 1], [], []>} : vector<8x8xf32>, vector<8x32xf32>, vector<8x32xf32> -> vector<8x32xf32>
      %c0_44 = arith.constant 0 : index
      %c0_45 = arith.constant 0 : index
      %63 = vector.load %arg21[%c0_44, %c0_45] : memref<8x32xf32, #tpu.memory_space<vmem>>, vector<8x32xf32>
      %c0_46 = arith.constant 0 : index
      %c0_47 = arith.constant 0 : index
      %64 = vector.load %arg13[%c0_46, %c0_47] : memref<32x32xf32, #tpu.memory_space<vmem>>, vector<32x32xf32>
      %cst_48 = arith.constant dense<0.000000e+00> : vector<8x32xf32>
      %65 = tpu.matmul %63, %64, %cst_48 {dimension_numbers = #tpu.dot_dimension_numbers<[1], [0], [0], [1], [0, 0, 1, 1], [], []>} : vector<8x32xf32>, vector<32x32xf32>, vector<8x32xf32> -> vector<8x32xf32>
      %66 = arith.addf %62, %65 : vector<8x32xf32>
      %c0_49 = arith.constant 0 : index
      %c0_50 = arith.constant 0 : index
      %67 = vector.load %arg14[%c0_49, %c0_50] : memref<1x32xf32, #tpu.memory_space<vmem>>, vector<1x32xf32>
      %68 = vector.broadcast %67 : vector<1x32xf32> to vector<8x32xf32>
      %69 = arith.addf %66, %68 : vector<8x32xf32>
      %c0_51 = arith.constant 0 : index
      %c0_52 = arith.constant 0 : index
      %70 = memref.load %arg19[%c0_51, %c0_52] : memref<1x1xf32, #tpu.memory_space<smem>>
      %cst_53 = arith.constant 0.000000e+00 : f32
      %71 = vector.broadcast %cst_53 : f32 to vector<8x32xf32>
      %72 = arith.maximumf %69, %71 : vector<8x32xf32>
      %cst_54 = arith.constant 0.000000e+00 : f32
      %73 = vector.broadcast %cst_54 : f32 to vector<8x32xf32>
      %74 = arith.minimumf %69, %73 : vector<8x32xf32>
      %75 = vector.broadcast %70 : f32 to vector<8x32xf32>
      %76 = arith.mulf %75, %74 : vector<8x32xf32>
      %77 = arith.addf %72, %76 : vector<8x32xf32>
      %c0_55 = arith.constant 0 : index
      %c0_56 = arith.constant 0 : index
      %78 = vector.load %arg15[%c0_55, %c0_56] : memref<32x128xf32, #tpu.memory_space<vmem>>, vector<32x128xf32>
      %cst_57 = arith.constant dense<0.000000e+00> : vector<8x128xf32>
      %79 = tpu.matmul %77, %78, %cst_57 {dimension_numbers = #tpu.dot_dimension_numbers<[1], [0], [0], [1], [0, 0, 1, 1], [], []>} : vector<8x32xf32>, vector<32x128xf32>, vector<8x128xf32> -> vector<8x128xf32>
      %c0_58 = arith.constant 0 : index
      %c0_59 = arith.constant 0 : index
      %80 = vector.load %arg16[%c0_58, %c0_59] : memref<1x128xf32, #tpu.memory_space<vmem>>, vector<1x128xf32>
      %81 = vector.broadcast %80 : vector<1x128xf32> to vector<8x128xf32>
      %82 = arith.addf %79, %81 : vector<8x128xf32>
      %c0_60 = arith.constant 0 : index
      %c0_61 = arith.constant 0 : index
      %83 = vector.load %arg20[%c0_60, %c0_61] : memref<8x128xf32, #tpu.memory_space<vmem>>, vector<8x128xf32>
      tpu.vector_store %arg20[%c0_60, %c0_61], %82 {strides = array<i32>} : memref<8x128xf32, #tpu.memory_space<vmem>>, vector<8x128xf32>,
    } else {
    }
    return
  }
  func.func @transform_0(%arg0: i32, %arg1: i32) -> (i32, i32) {
    %c0_i32 = arith.constant 0 : i32
    %c0_i32_0 = arith.constant 0 : i32
    return %arg1, %c0_i32 : i32, i32
  }
  func.func @transform_1(%arg0: i32, %arg1: i32) -> (i32, i32) {
    %c0_i32 = arith.constant 0 : i32
    %c0_i32_0 = arith.constant 0 : i32
    return %arg1, %c0_i32 : i32, i32
  }
  func.func @transform_2(%arg0: i32, %arg1: i32) -> (i32, i32) {
    %c0_i32 = arith.constant 0 : i32
    %c0_i32_0 = arith.constant 0 : i32
    return %arg1, %c0_i32 : i32, i32
  }
  func.func @transform_3(%arg0: i32, %arg1: i32) -> (i32, i32) {
    %c0_i32 = arith.constant 0 : i32
    %c0_i32_0 = arith.constant 0 : i32
    %c0_i32_1 = arith.constant 0 : i32
    return %c0_i32, %c0_i32_0 : i32, i32
  }
  func.func @transform_4(%arg0: i32, %arg1: i32) -> (i32, i32) {
    %c0_i32 = arith.constant 0 : i32
    %c0_i32_0 = arith.constant 0 : i32
    %c0_i32_1 = arith.constant 0 : i32
    return %c0_i32, %c0_i32_0 : i32, i32
  }
  func.func @transform_5(%arg0: i32, %arg1: i32) -> (i32, i32) {
    %c0_i32 = arith.constant 0 : i32
    %c0_i32_0 = arith.constant 0 : i32
    %c0_i32_1 = arith.constant 0 : i32
    return %c0_i32, %c0_i32_0 : i32, i32
  }
  func.func @transform_6(%arg0: i32, %arg1: i32) -> (i32, i32) {
    %c0_i32 = arith.constant 0 : i32
    %c0_i32_0 = arith.constant 0 : i32
    %c0_i32_1 = arith.constant 0 : i32
    return %c0_i32, %c0_i32_0 : i32, i32
  }
  func.func @transform_7(%arg0: i32, %arg1: i32) -> (i32, i32) {
    %c0_i32 = arith.constant 0 : i32
    %c0_i32_0 = arith.constant 0 : i32
    %c0_i32_1 = arith.constant 0 : i32
    return %c0_i32, %c0_i32_0 : i32, i32
  }
  func.func @transform_8(%arg0: i32, %arg1: i32) -> (i32, i32) {
    %c0_i32 = arith.constant 0 : i32
    %c0_i32_0 = arith.constant 0 : i32
    %c0_i32_1 = arith.constant 0 : i32
    return %c0_i32, %c0_i32_0 : i32, i32
  }
  func.func @transform_9(%arg0: i32, %arg1: i32) -> (i32, i32) {
    %c0_i32 = arith.constant 0 : i32
    %c0_i32_0 = arith.constant 0 : i32
    %c0_i32_1 = arith.constant 0 : i32
    return %c0_i32, %c0_i32_0 : i32, i32
  }
  func.func @transform_10(%arg0: i32, %arg1: i32) -> (i32, i32) {
    %c0_i32 = arith.constant 0 : i32
    %c0_i32_0 = arith.constant 0 : i32
    %c0_i32_1 = arith.constant 0 : i32
    return %c0_i32, %c0_i32_0 : i32, i32
  }
  func.func @transform_11(%arg0: i32, %arg1: i32) -> (i32, i32) {
    %c0_i32 = arith.constant 0 : i32
    %c0_i32_0 = arith.constant 0 : i32
    %c0_i32_1 = arith.constant 0 : i32
    return %c0_i32, %c0_i32_0 : i32, i32
  }
  func.func @transform_12(%arg0: i32, %arg1: i32) -> (i32, i32) {
    %c0_i32 = arith.constant 0 : i32
    %c0_i32_0 = arith.constant 0 : i32
    %c0_i32_1 = arith.constant 0 : i32
    return %c0_i32, %c0_i32_0 : i32, i32
  }
  func.func @transform_13(%arg0: i32, %arg1: i32) -> (i32, i32) {
    %c0_i32 = arith.constant 0 : i32
    %c0_i32_0 = arith.constant 0 : i32
    %c0_i32_1 = arith.constant 0 : i32
    return %c0_i32, %c0_i32_0 : i32, i32
  }
  func.func @transform_14(%arg0: i32, %arg1: i32) -> (i32, i32) {
    %c0_i32 = arith.constant 0 : i32
    %c0_i32_0 = arith.constant 0 : i32
    %c0_i32_1 = arith.constant 0 : i32
    return %c0_i32, %c0_i32_0 : i32, i32
  }
  func.func @transform_15(%arg0: i32, %arg1: i32) -> (i32, i32) {
    %c0_i32 = arith.constant 0 : i32
    %c0_i32_0 = arith.constant 0 : i32
    %c0_i32_1 = arith.constant 0 : i32
    return %c0_i32, %c0_i32_0 : i32, i32
  }
  func.func @transform_16(%arg0: i32, %arg1: i32) -> (i32, i32) {
    %c0_i32 = arith.constant 0 : i32
    %c0_i32_0 = arith.constant 0 : i32
    %c0_i32_1 = arith.constant 0 : i32
    return %c0_i32, %c0_i32_0 : i32, i32
  }
  func.func @transform_17(%arg0: i32, %arg1: i32) -> (i32, i32) {
    %c0_i32 = arith.constant 0 : i32
    %c0_i32_0 = arith.constant 0 : i32
    %c0_i32_1 = arith.constant 0 : i32
    return %c0_i32, %c0_i32_0 : i32, i32
  }
  func.func @transform_18(%arg0: i32, %arg1: i32) -> (i32, i32) {
    %c0_i32 = arith.constant 0 : i32
    %c0_i32_0 = arith.constant 0 : i32
    return %arg0, %c0_i32 : i32, i32
  }
}

</mosaic_0001>

<bundles_post_ra>
// kernel: tpu_custom_call.1
= control target key start
LH: loop header
LB: loop body
LE: loop exit
PB: predicated region body
PF: predicated region fallthrough
CT: control target
= control target key end

     0   :  { %s1679_s0 = inlined_call_operand.vmem [shape: s32[16,1], index: 0, kind: input, shape index: {}]   ;;  %s1680_s1 = inlined_call_operand.vmem [shape: s32[16,1], index: 1, kind: input, shape index: {}]   ;;  %s1681_s2 = inlined_call_operand.vmem [shape: f32[16,4], index: 2, kind: input, shape index: {}]   ;;  %s1682_s3 = inlined_call_operand.hbm [shape: f32[8,8], index: 3, kind: input, shape index: {}]   ;;  %s1683_s4 = inlined_call_operand.hbm [shape: f32[8,32], index: 4, kind: input, shape index: {}]   ;;  %s1684_s5 = inlined_call_operand.hbm [shape: f32[8,32], index: 5, kind: input, shape index: {}]   ;;  %s1685_s6 = inlined_call_operand.hbm [shape: f32[4,32], index: 6, kind: input, shape index: {}]   ;;  %s1686_s7 = inlined_call_operand.vmem [shape: f32[1,32], index: 7, kind: input, shape index: {}]   ;;  %s1687_s8 = inlined_call_operand.vmem [shape: f32[32,32], index: 8, kind: input, shape index: {}]   ;;  %s1688_s9 = inlined_call_operand.vmem [shape: f32[1,32], index: 9, kind: input, shape index: {}]   ;;  %s1689_s10 = inlined_call_operand.hbm [shape: f32[8,32], index: 10, kind: input, shape index: {}]   ;;  %s1690_s11 = inlined_call_operand.vmem [shape: f32[32,32], index: 11, kind: input, shape index: {}]   ;;  %s1691_s12 = inlined_call_operand.vmem [shape: f32[1,32], index: 12, kind: input, shape index: {}]   ;;  %s1692_s13 = inlined_call_operand.vmem [shape: f32[32,128], index: 13, kind: input, shape index: {}]   ;;  %s1693_s14 = inlined_call_operand.vmem [shape: f32[1,128], index: 14, kind: input, shape index: {}]   ;;  %s1694_s15 = inlined_call_operand.<no memory space> [shape: f32[1,1], index: 15, kind: input, shape index: {}]   ;;  %s1695_s16 = inlined_call_operand.<no memory space> [shape: f32[1,1], index: 16, kind: input, shape index: {}]   ;;  %s1696_s17 = inlined_call_operand.<no memory space> [shape: f32[1,1], index: 17, kind: input, shape index: {}]   ;;  %s1697_s18 = inlined_call_operand.hbm [shape: f32[8,128], index: 18, kind: output, shape index: {}]  }
   0x1   :  { %1701 = sst [smem:[#allocation20_spill]] %s1679_s0 }
   0x2   :  { %1702 = sst [smem:[#allocation21_spill]] %s1680_s1 }
   0x3   :  { %1703 = sst [smem:[#allocation22_spill]] %s1681_s2 }
   0x4   :  { %26 = vsyncpa [#allocation7], 0 }
   0x5   :  { %27 = vsyncpa [#allocation10], 0 }
   0x6   :  { %28 = vsyncpa [#allocation13], 0 }
   0x7   :  { %29 = vsyncpa [#allocation8], 0  ;;  %s1391_s27 = smov [#allocation9]   ;;  %s1392_s29 = smov [#allocation12]  }
   0x8   :  { %s52_s28 = sshll.u32 %s1391_s27, 4  ;;  %s72_s30 = sshll.u32 %s1392_s29, 4  ;;  %s53_s28 = int_to_ptr.vmem [resolvable:$true] %s52_s28  ;;  %s73_s30 = int_to_ptr.vmem [resolvable:$true] %s72_s30 }
   0x9   :  { %s1251_s1 = scalar_lea.hbm %s1683_s4, 128 }
   0xa   :  { %p1252_p0 = scmp.ne.s32.totalorder %s1683_s4, %s1251_s1  ;;  %p1255_p1 = scmp.lt.u32.totalorder %s1251_s1, %s1683_s4 }
   0xc   :  { %p1257_p2 = pnand %p1255_p1, %p1252_p0 }
   0xe   :  { %1260 = shalt.err (!%p1257_p2)
}
   0xf   :  { %s1261_s23 = scalar_lea.vmem %s53_s28, 128  ;;  %p1266_p4 = scmp.lt.s32.totalorder %s53_s28, %s53_s28 }
  0x10   :  { %p1262_p3 = scmp.ne.s32.totalorder %s53_s28, %s1261_s23  ;;  %p1267_p5 = scmp.lt.s32.totalorder %s1261_s23, %s1261_s23 }
  0x12   :  { %p1268_p6 = por %p1267_p5, %p1266_p4 }
  0x14   :  { %p1269_p7 = pnand %p1268_p6, %p1262_p3 }
  0x16   :  { %1272 = shalt.err (!%p1269_p7)
}
  0x17   :  { %55 = dma.hbm_to_vmem [thread:$0]  %s1683_s4, 128, %s53_s28, [#allocation10]  }
  0x18   :  { %s1273_s29 = scalar_lea.hbm %s1685_s6, 64 }
  0x19   :  { %p1274_p8 = scmp.ne.s32.totalorder %s1685_s6, %s1273_s29  ;;  %p1277_p9 = scmp.lt.u32.totalorder %s1273_s29, %s1685_s6 }
  0x1b   :  { %p1279_p10 = pnand %p1277_p9, %p1274_p8 }
  0x1d   :  { %1282 = shalt.err (!%p1279_p10)
}
  0x1e   :  { %s1283_s21 = scalar_lea.vmem %s73_s30, 64  ;;  %p1288_p12 = scmp.lt.s32.totalorder %s73_s30, %s73_s30 }
  0x1f   :  { %p1284_p11 = scmp.ne.s32.totalorder %s73_s30, %s1283_s21  ;;  %p1289_p13 = scmp.lt.s32.totalorder %s1283_s21, %s1283_s21 }
  0x21   :  { %p1290_p0 = por %p1289_p13, %p1288_p12 }
  0x23   :  { %p1291_p1 = pnand %p1290_p0, %p1284_p11 }
  0x25   :  { %1294 = shalt.err (!%p1291_p1)
}
  0x26   :  { %75 = dma.hbm_to_vmem [thread:$0]  %s1685_s6, 64, %s73_s30, [#allocation13]  }
  0x27   :  { %s1393_s22 = smov [#allocation6]   ;;  %s1394_s23 = smov [#allocation11]  }
  0x28   :  { %s42_s2 = sshll.u32 %s1393_s22, 4  ;;  %s62_s24 = sshll.u32 %s1394_s23, 4  ;;  %s43_s2 = int_to_ptr.vmem [resolvable:$true] %s42_s2  ;;  %s63_s24 = int_to_ptr.vmem [resolvable:$true] %s62_s24 }
  0x29   :  { %s1295_s27 = scalar_lea.hbm %s1682_s3, 128 }
  0x2a   :  { %p1296_p2 = scmp.ne.s32.totalorder %s1682_s3, %s1295_s27  ;;  %p1299_p3 = scmp.lt.u32.totalorder %s1295_s27, %s1682_s3 }
  0x2c   :  { %p1301_p4 = pnand %p1299_p3, %p1296_p2 }
  0x2e   :  { %1304 = shalt.err (!%p1301_p4)
}
  0x2f   :  { %s1305_s6 = scalar_lea.vmem %s43_s2, 128  ;;  %p1310_p6 = scmp.lt.s32.totalorder %s43_s2, %s43_s2 }
  0x30   :  { %p1306_p5 = scmp.ne.s32.totalorder %s43_s2, %s1305_s6  ;;  %p1311_p7 = scmp.lt.s32.totalorder %s1305_s6, %s1305_s6 }
  0x32   :  { %p1312_p8 = por %p1311_p7, %p1310_p6 }
  0x34   :  { %p1313_p9 = pnand %p1312_p8, %p1306_p5 }
  0x36   :  { %1316 = shalt.err (!%p1313_p9)
}
  0x37   :  { %45 = dma.hbm_to_vmem [thread:$0]  %s1682_s3, 128, %s43_s2, [#allocation7]  }
  0x38   :  { %s1317_s28 = scalar_lea.hbm %s1684_s5, 128 }
  0x39   :  { %p1318_p10 = scmp.ne.s32.totalorder %s1684_s5, %s1317_s28  ;;  %p1321_p11 = scmp.lt.u32.totalorder %s1317_s28, %s1684_s5 }
  0x3b   :  { %p1323_p12 = pnand %p1321_p11, %p1318_p10 }
  0x3d   :  { %1326 = shalt.err (!%p1323_p12)
}
  0x3e   :  { %s1327_s27 = scalar_lea.vmem %s63_s24, 128  ;;  %p1332_p0 = scmp.lt.s32.totalorder %s63_s24, %s63_s24 }
  0x3f   :  { %p1328_p13 = scmp.ne.s32.totalorder %s63_s24, %s1327_s27  ;;  %p1333_p1 = scmp.lt.s32.totalorder %s1327_s27, %s1327_s27 }
  0x41   :  { %p1334_p2 = por %p1333_p1, %p1332_p0 }
  0x43   :  { %p1335_p3 = pnand %p1334_p2, %p1328_p13 }
  0x45   :  { %1338 = shalt.err (!%p1335_p3)
}
  0x46   :  { %65 = dma.hbm_to_vmem [thread:$0]  %s1684_s5, 128, %s63_s24, [#allocation10]  }
  0x47   :  { %s1395_s29 = smov [#allocation14]   ;;  %s1339_s6 = scalar_lea.hbm %s1689_s10, 128 }
  0x48   :  { %s88_s0 = sshll.u32 %s1395_s29, 4  ;;  %p1340_p4 = scmp.ne.s32.totalorder %s1689_s10, %s1339_s6  ;;  %s89_s0 = int_to_ptr.vmem [resolvable:$true] %s88_s0 }
  0x49   :  { %p1343_p5 = scmp.lt.u32.totalorder %s1339_s6, %s1689_s10 }
  0x4b   :  { %p1345_p6 = pnand %p1343_p5, %p1340_p4 }
  0x4d   :  { %1348 = shalt.err (!%p1345_p6)
}
  0x4e   :  { %s1349_s28 = scalar_lea.vmem %s89_s0, 128  ;;  %p1354_p8 = scmp.lt.s32.totalorder %s89_s0, %s89_s0 }
  0x4f   :  { %p1350_p7 = scmp.ne.s32.totalorder %s89_s0, %s1349_s28  ;;  %p1355_p9 = scmp.lt.s32.totalorder %s1349_s28, %s1349_s28 }
  0x51   :  { %p1356_p10 = por %p1355_p9, %p1354_p8 }
  0x53   :  { %p1357_p11 = pnand %p1356_p10, %p1350_p7 }
  0x55   :  { %1360 = shalt.err (!%p1357_p11)
}
  0x56   :  { %91 = dma.hbm_to_vmem [thread:$0]  %s1689_s10, 128, %s89_s0, [#allocation13]  }
  0x57   :  { %1383 = dma.done.wait [#allocation7], 128  }
  0x58   :  { %1384 = vsyncadd [#allocation7], 4294967168 }
  0x59   :  { %1385 = dma.done.wait [#allocation10], 256  }
  0x5a   :  { %1386 = vsyncadd [#allocation10], 4294967040 }
  0x5b   :  { %1387 = dma.done.wait [#allocation13], 192  }
  0x5c   :  { %1388 = vsyncadd [#allocation13], 4294967104  ;;  %v1396_v0 = vmov 0   ;;  %s1704_s25 = sld [smem:[#allocation21_spill]]  ;;  %s1705_s3 = sld [smem:[#allocation20_spill]]  ;;  %v1568_v5 = vld [vmem:[#allocation6] sm:$0xff]  ;;  %v134_v7 = vlaneseq  ;;  %v590_v36 = vstv %s1694_s15  ;;  %v693_v51 = vstv %s1695_s16 }
  0x5d   :  { %1249 = vset.pattern.permute.xlu0 %v1396_v0  ;;  %1250 = vset.pattern.permute.xlu1 %v1396_v0  ;;  %v324_v6 = vld [vmem:[#allocation11] sm:$0xff]  ;;  %vm160_vm0 = vcmask 64512   ;;  %v1397_v11 = vmov 0.0   ;;  %v323_v18 = vld [vmem:[#allocation9] sm:$0xff]  ;;  %v487_v23 = vld [vmem:[#allocation12] sm:$0xf] }
  0x5e   :  { %1147 = vmatprep.subr.mxu1 %v1568_v5  ;;  %1142 = vmatprep.subr.mxu0 %v1568_v5  ;;  %v135_v8 = vand.u32 127, %v134_v7  ;;  %vm495_vm5 = vcmask 1043456   ;;  %s1706_s6 = sld [smem:[#allocation22_spill]]  ;;  %vm488_vm6 = vcmask 31744   ;;  %v595_v26 = vld [vmem:[%s1687_s8] sm:$0xff]  ;;  %v596_v27 = vld [vmem:[%s1687_s8 + $0x8] sm:$0xff] }
  0x5f   :  { %1148 = vmatpush3.msra.mxu1 %v1568_v5  ;;  %1143 = vmatpush3.msra.mxu0 %v1568_v5  ;;  %v1212_v28 = vpack.c.bf16 %v596_v27, %v595_v26  ;;  %v597_v29 = vld [vmem:[%s1687_s8 + $0x10] sm:$0xff]  ;;  %v598_v30 = vld [vmem:[%s1687_s8 + $0x18] sm:$0xff]  ;;  %vm125_vm7 = vcmask 261120   ;;  %v1096_v32 = vld [vmem:[%s1686_s7] ss:$0 sm:$0xff]  ;;  %v1398_v46 = vmov 0.0|0.0  }
  0x60   :  { %1152 = vmatprep.subr.mxu0 %v324_v6  ;;  %v1216_v31 = vpack.c.bf16 %v598_v30, %v597_v29  ;;  %126 = vst.msk [vmem:[#allocation2] sm:$0xff] %vm125_vm7, %v1397_v11  ;;  %vm1399_vm8 = vmmov 0   ;;  %v1097_v47 = vld [vmem:[%s1688_s9] ss:$0 sm:$0xff]  ;;  %vm731_vm9 = vcmask 130048   ;;  %v816_v0 = vld [vmem:[%s1690_s11 + $0x8] sm:$0xff] }
  0x61   :  { %1213 = vmatprep.subr.bf16.mxu1 %v1212_v28  ;;  %v815_v63 = vld [vmem:[%s1690_s11] sm:$0xff]  ;;  %s1400_s10 = smov [#allocation15]  }
  0x62   :  { %v130_v1 = vld [vmem:[%s1704_s25] sm:$0xff]  ;;  %v131_v3 = vld [vmem:[%s1704_s25 + $0x8] sm:$0xff]  ;;  %s1070_s7 = sshll.u32 %s1400_s10, 4  ;;  %s1071_s7 = int_to_ptr.vmem [resolvable:$true] %s1070_s7 }
  0x63   :  { %v128_v2 = vld [vmem:[%s1705_s3] sm:$0xff]  ;;  %149 = vperm.xlu0 %1249, %v130_v1   ;;  %v129_v4 = vld [vmem:[%s1705_s3 + $0x8] sm:$0xff]  ;;  %v1224_v1 = vpack.c.bf16 %v816_v0, %v815_v63  ;;  %p1366_p13 = scmp.lt.s32.totalorder %s1071_s7, %s1071_s7 }
  0x64   :  { %137 = vperm.xlu1 %1250, %v128_v2   ;;  %v132_v24 = vld [vmem:[%s1706_s6] sm:$0xff]  ;;  %v133_v25 = vld [vmem:[%s1706_s6 + $0x8] sm:$0xff]  ;;  %v817_v2 = vld [vmem:[%s1690_s11 + $0x10] sm:$0xff] }
  0x65   :  { %v1104_v29 = vld [vmem:[%s1693_s14] ss:$0 sm:$0xff] }
  0x67   :  { %152 = vperm.xlu0 %1249, %v131_v3   ;;  %v818_v3 = vld [vmem:[%s1690_s11 + $0x18] sm:$0xff]  ;;  %v698_v7 = vld [vmem:[#allocation2] sm:$0xff] }
  0x68   :  { %140 = vperm.xlu1 %1250, %v129_v4   ;;  %v813_v4 = vld [vmem:[#allocation14] sm:$0xff] }
  0xe2   :  { %v150_v9 = vpop.permute.xlu0 %149 }
  0xe3   :  { %v138_v10 = vpop.permute.xlu1 %137  ;;  %vm154_vm1 = vcmp.eq.s32.totalorder %v135_v8, %v150_v9 }
  0xe4   :  { %vm142_vm2 = vcmp.eq.s32.totalorder %v135_v8, %v138_v10  ;;  %v1083_v12 = vsel %vm154_vm1, 1.0, %v1397_v11 }
  0xe5   :  { %v1081_v13 = vsel %vm142_vm2, 1.0, %v1397_v11  ;;  %1149 = vmatprep.mubr.msk.f32.mxu1 %vm160_vm0, %v1083_v12 }
  0xe6   :  { %699 = vxpose.xlu0.b32.start [1/2] (short) (narrow) %v1081_v13, 8  ;;  %v153_v14 = vpop.permute.xlu0 %152  ;;  %1144 = vmatprep.mubr.msk.f32.mxu0 %vm160_vm0, %v1081_v13 }
  0xe7   :  { %v141_v15 = vpop.permute.xlu1 %140  ;;  %vm155_vm3 = vcmp.eq.s32.totalorder %v135_v8, %v153_v14 }
  0xe8   :  { %vm143_vm4 = vcmp.eq.s32.totalorder %v135_v8, %v141_v15  ;;  %v1084_v16 = vsel %vm155_vm3, 1.0, %v1397_v11 }
  0xe9   :  { %v1082_v17 = vsel %vm143_vm4, 1.0, %v1397_v11  ;;  %1150 = vmatmul.mubr.msk.f32.vlgmr.msra.gmra.mrb[0].mxu1 %vm160_vm0, %v1084_v16  ;;  %v981_v16 = vld [vmem:[%s1692_s13 + $0x10] sm:$0xff] }
  0xea   :  { %1145 = vmatmul.mubr.msk.f32.vlgmr.msra.gmra.mrb[0].mxu0 %vm160_vm0, %v1082_v17  ;;  %700 = vxpose.xlu0.b32.end [2/2] (short) (narrow) %v1082_v17, 8  ;;  %v982_v17 = vld [vmem:[%s1692_s13 + $0x18] sm:$0xff] }
  0xeb   :  { %1153 = vmatpush3.msra.mxu0 %v324_v6  ;;  %1215 = vmatpush3.bf16.msra.mxu1 %v1212_v28  ;;  %v1227_v6 = vpack.c.bf16 %v818_v3, %v817_v2 }
  0xec   :  { %1157 = vmatprep.subr.mxu0 %v323_v18  ;;  %1217 = vmatprep.subr.bf16.mxu1 %v1216_v31 }
  0xef   :  { %1219 = vmatpush3.bf16.msra.mxu1 %v1216_v31 }
  0xf0   :  { %1220 = vmatprep.subr.bf16.mxu1 %v1398_v46 }
 0x166   :  { %v715_v62 = vpop.trf.xlu0 }
 0x1bc   :  { %v1151_v19 = vpop.f32.mrb[0].mxu1 }
 0x1bd   :  { %v1146_v20 = vpop.f32.mrb[0].mxu0  ;;  %v314_v21 = vpop.f32.mrb[1].mxu1 }
 0x1be   :  { %v233_v22 = vpop.f32.mrb[1].mxu0  ;;  %1154 = vmatprep.mubr.msk.f32.mxu0 %vm160_vm0, %v314_v21 }
 0x1bf   :  { %1155 = vmatmul.mubr.msk.f32.vlgmr.msra.gmra.mrb[2].mxu0 %vm160_vm0, %v1151_v19 }
 0x1c0   :  { %1158 = vmatpush3.msra.mxu0 %v323_v18  ;;  %1159 = vmatprep.mubr.msk.f32.mxu0 %vm160_vm0, %v233_v22  ;;  %v1233_v18 = vpack.c.bf16 %v982_v17, %v981_v16 }
 0x1c1   :  { %1162 = vmatprep.subr.msk.mxu0 %vm495_vm5, %v487_v23 }
 0x1c7   :  { %1160 = vmatmul.mubr.msk.f32.vlgmr.msra.gmra.mrb[2].mxu0 %vm160_vm0, %v1146_v20  ;;  %v1103_v20 = vld [vmem:[%s1691_s12] ss:$0 sm:$0xff]  ;;  %s1361_s12 = scalar_lea.vmem %s1071_s7, 128 }
 0x1c8   :  { %1163 = vmatpush3.msk.msra.mxu0 %vm495_vm5, %v487_v23  ;;  %1164 = vmatprep.mubr.msk.f32.mxu0 %vm488_vm6, %v132_v24  ;;  %v976_v24 = vstv %s1696_s17  ;;  %p1362_p12 = scmp.ne.s32.totalorder %s1071_s7, %s1361_s12  ;;  %p1367_p0 = scmp.lt.s32.totalorder %s1361_s12, %s1361_s12 }
 0x1c9   :  { %1223 = vmatprep.subr.bf16.mxu0 %v1398_v46 }
 0x1ca   :  { %p1368_p1 = por %p1367_p0, %p1366_p13 }
 0x1cc   :  { %p1369_p2 = pnand %p1368_p1, %p1362_p12 }
 0x1cf   :  { %1165 = vmatmul.mubr.msk.f32.vlgmr.msra.gmra.mrb[2].mxu0 %vm488_vm6, %v133_v25 }
 0x1d0   :  { %1193 = vmatprep.mubr.msk.f32.mxu0 %vm1399_vm8, %v1397_v11  ;;  %1225 = vmatpush3.bf16.msra.mxu0 %v1224_v1 }
 0x1d1   :  { %1226 = vmatprep.subr.bf16.mxu0 %v1398_v46 }
 0x1d4   :  { %1228 = vmatpush3.bf16.msra.mxu0 %v1227_v6 }
 0x2a2   :  { %v1166_v33 = vpop.f32.mrb[2].mxu0 }
 0x2a3   :  { %v584_v34 = vadd.f32 %v1166_v33, %v1096_v32  ;;  %v565_v35 = vpop.f32.mrb[3].mxu0 }
 0x2a4   :  { %v583_v37 = vadd.f32 %v1096_v32, %v565_v35 }
 0x2a5   :  { %v589_v38 = vmin.f32 %v584_v34, 0.0  ;;  %v587_v43 = vmax.f32 %v584_v34, 0.0 }
 0x2a6   :  { %v588_v39 = vmin.f32 %v583_v37, 0.0  ;;  %v586_v41 = vmax.f32 %v583_v37, 0.0 }
 0x2a7   :  { %v592_v40 = vmul.f32 %v590_v36, %v589_v38 }
 0x2a8   :  { %v591_v42 = vmul.f32 %v590_v36, %v588_v39 }
 0x2a9   :  { %v594_v45 = vadd.f32 %v592_v40, %v587_v43 }
 0x2aa   :  { %v593_v44 = vadd.f32 %v591_v42, %v586_v41 }
 0x2ac   :  { %1175 = vmatprep.mubr.msk.f32.mxu1 %vm125_vm7, %v593_v44 }
 0x2ad   :  { %1176 = vmatmul.mubr.msk.f32.vlgmr.msra.gmra.mrb[2].mxu1 %vm125_vm7, %v594_v45 }
 0x2ae   :  { %1182 = vmatprep.mubr.msk.f32.mxu1 %vm1399_vm8, %v1397_v11 }
 0x380   :  { %v1177_v48 = vpop.f32.mrb[2].mxu1 }
 0x381   :  { %v685_v49 = vadd.f32 %v1177_v48, %v1097_v47  ;;  %v679_v50 = vpop.f32.mrb[3].mxu1 }
 0x382   :  { %v680_v52 = vadd.f32 %v1097_v47, %v679_v50 }
 0x383   :  { %v692_v53 = vmin.f32 %v685_v49, 0.0  ;;  %v690_v55 = vmax.f32 %v685_v49, 0.0 }
 0x384   :  { %v691_v54 = vmin.f32 %v680_v52, 0.0  ;;  %v689_v57 = vmax.f32 %v680_v52, 0.0 }
 0x385   :  { %v695_v56 = vmul.f32 %v693_v51, %v692_v53 }
 0x386   :  { %v694_v58 = vmul.f32 %v693_v51, %v691_v54 }
 0x387   :  { %v697_v59 = vadd.f32 %v695_v56, %v690_v55 }
 0x388   :  { %v696_v60 = vadd.f32 %v694_v58, %v689_v57 }
 0x38a   :  { %v1221_v61 = vpack.c.bf16 %v697_v59, %v696_v60 }
 0x38c   :  { %1222 = vmatpush3.bf16.msra.mxu1 %v1221_v61 }
 0x38d   :  { %1196 = vmatprep.subr.mxu1 %v1397_v11 }
 0x38f   :  { %1183 = vmatmul.mubr.msk.f32.vlgmr.msra.gmra.mrb[4].mxu1 %vm731_vm9, %v715_v62 }
 0x390   :  { %1198 = vmatprep.mubr.msk.f32.mxu1 %vm1399_vm8, %v1397_v11  ;;  %1197 = vmatpush3.msra.mxu1 %v813_v4 }
 0x391   :  { %1229 = vmatprep.subr.bf16.mxu1 %v1398_v46 }
 0x393   :  { %1199 = vmatmul.mubr.msk.f32.vlgmr.msra.gmra.mrb[6].mxu1 %vm160_vm0, %v1568_v5  ;;  %v979_v5 = vld [vmem:[%s1692_s13] sm:$0xff] }
 0x394   :  { %1209 = vmatprep.mubr.msk.f32.mxu1 %vm1399_vm8, %v1397_v11  ;;  %v980_v11 = vld [vmem:[%s1692_s13 + $0x8] sm:$0xff] }
 0x395   :  { %v1230_v15 = vpack.c.bf16 %v980_v11, %v979_v5 }
 0x397   :  { %1231 = vmatpush3.bf16.msra.mxu1 %v1230_v15 }
 0x398   :  { %1232 = vmatprep.subr.bf16.mxu1 %v1398_v46 }
 0x39b   :  { %1234 = vmatpush3.bf16.msra.mxu1 %v1233_v18 }
 0x462   :  { %v801_v8 = vpop.f32.mrb[4].mxu1 }
 0x463   :  { %v805_v9 = vadd.f32 %v801_v8, %v698_v7  ;;  %v1184_v10 = vpop.f32.mrb[5].mxu1 }
 0x465   :  { %806 = vst.msk [vmem:[#allocation2] sm:$0xff] %vm125_vm7, %v805_v9 }
 0x466   :  { %v961_v13 = vpop.f32.mrb[6].mxu1 }
 0x467   :  { %v1200_v14 = vpop.f32.mrb[7].mxu1 }
 0x46c   :  { %v814_v12 = vld [vmem:[#allocation2] sm:$0xff] }
 0x46d   :  { %1194 = vmatmul.mubr.msk.f32.vlgmr.msra.gmra.mrb[4].mxu0 %vm125_vm7, %v814_v12 }
 0x540   :  { %v888_v19 = vpop.f32.mrb[4].mxu0 }
 0x541   :  { %v962_v21 = vadd.f32 %v961_v13, %v888_v19  ;;  %v1195_v22 = vpop.f32.mrb[5].mxu0 }
 0x543   :  { %v972_v23 = vadd.f32 %v1103_v20, %v962_v21 }
 0x545   :  { %v975_v25 = vmin.f32 %v972_v23, 0.0  ;;  %v974_v26 = vmax.f32 %v972_v23, 0.0 }
 0x547   :  { %v977_v27 = vmul.f32 %v976_v24, %v975_v25 }
 0x549   :  { %v978_v28 = vadd.f32 %v977_v27, %v974_v26 }
 0x54b   :  { %1210 = vmatmul.mubr.msk.f32.vlgmr.msra.gmra.mrb[8].mxu1 %vm125_vm7, %v978_v28 }
 0x61e   :  { %v1059_v30 = vpop.f32.mrb[8].mxu1 }
 0x61f   :  { %v1060_v31 = vadd.f32 %v1104_v29, %v1059_v30  ;;  %v1211_v32 = vpop.f32.mrb[9].mxu1 }
 0x621   :  { %1063 = vst [vmem:[#allocation15] sm:$0xff] %v1060_v31 }
 0x622   :  { %1372 = shalt.err (!%p1369_p2)
}
 0x623   :  { %s1373_s15 = scalar_lea.hbm %s1697_s18, 128 }
 0x624   :  { %p1374_p3 = scmp.ne.s32.totalorder %s1697_s18, %s1373_s15  ;;  %p1377_p4 = scmp.lt.u32.totalorder %s1373_s15, %s1697_s18 }
 0x626   :  { %p1379_p5 = pnand %p1377_p4, %p1374_p3 }
 0x628   :  { %1382 = shalt.err (!%p1379_p5)
}
 0x629   :  { %1073 = dma.vmem_to_hbm [thread:$0]  %s1071_s7, 128, %s1697_s18, [#allocation8]  }
 0x62a   :  { %1389 = dma.done.wait [#allocation8], 128  }
 0x62b   :  { %1390 = vsyncadd [#allocation8], 4294967168 }
 0x62c   :  { %1077 = vsyncpa [#allocation7], 1 }
 0x62d   :  { %1078 = vsyncpa [#allocation10], 1 }
 0x62e   :  { %1079 = vsyncpa [#allocation13], 1 }
 0x62f   :  { %1080 = vsyncpa [#allocation8], 1 }

</bundles_post_ra>
